<compile_context>
chip_gen: v6e
topology: v6e:2x2x1
jax: 0.10.0
libtpu: 0.0.40
codegen_flags: <defaults>
</compile_context>

<pallas_src>
import functools

import jax
import jax.numpy as jnp
from jax.experimental import pallas as pl
from jax.experimental.pallas import tpu as pltpu

NCOL = 12
NROW = 4
STATE_DIM = NCOL * NROW      # 48
HIDDEN_DIM = 128

# dot_general dimension numbers for  A[1,H] . B[TB,H]^T -> [1,TB]
_NT_DIMS = (((1,), (1,)), ((), ()))


def value_net_kernel(x_ref, w1_ref, b1_ref, w2_ref, b2_ref, o_ref):
    # fc1 on the MXU: [TB, S] @ [S, H] -> f32 [TB, H]  (f32 accumulation).
    h = jnp.dot(x_ref[...], w1_ref[...], preferred_element_type=jnp.float32)
    # Bias + ReLU on the VPU in f32 (v5e has no bf16 VPU path).
    h = jnp.maximum(h + b1_ref[...], 0.0)
    # fc2: contract the hidden dim against the [1, H] weight row.  The result
    # [1, TB] is lane-dense along the batch so the store below is unmasked.
    v = jax.lax.dot_general(w2_ref[...], h, _NT_DIMS,
                            preferred_element_type=jnp.float32)
    o_ref[...] = (v + b2_ref[...]).astype(o_ref.dtype)


def _round_up(n, m):
    return ((n + m - 1) // m) * m


@functools.partial(jax.jit, static_argnames=("block_b", "compute_dtype"))
def value_net_forward(x, w1, b1, w2, b2, *, block_b=1024, compute_dtype=None):
    """x: [B, S] f32; w1: [S, H]; b1: [1, H]; w2: [1, H]; b2: [1, 1] -> [B, 1] f32."""
    B, S = x.shape
    H = w1.shape[1]
    assert w1.shape == (S, H) and b1.shape == (1, H)
    assert w2.shape == (1, H) and b2.shape == (1, 1)

    # Optional bf16 boundary cast (v6e/v7x: halves HBM bytes for x, matches
    # the bf16 MXU).  Accumulation / bias / ReLU stay f32 inside the kernel.
    if compute_dtype is not None:
        x = x.astype(compute_dtype)
        w1 = w1.astype(compute_dtype)

    # Batch tile: a single tile if the (8-padded) batch fits in block_b,
    # otherwise block_b-row tiles.  block_b must be a multiple of 128 so the
    # lane-dense (1, tb) output block is legal when the grid has >1 step.
    b_pad8 = _round_up(B, 8)
    if b_pad8 <= block_b:
        tb = b_pad8
        b_pad = b_pad8
    else:
        assert block_b % 128 == 0, "block_b must be a multiple of 128"
        tb = block_b
        b_pad = _round_up(B, tb)
    grid = b_pad // tb

    if b_pad != B:
        x = jnp.pad(x, ((0, b_pad - B), (0, 0)))

    out = pl.pallas_call(
        value_net_kernel,
        out_shape=jax.ShapeDtypeStruct((1, b_pad), jnp.float32),
        grid=(grid,),
        in_specs=[
            pl.BlockSpec((tb, S), lambda i: (i, 0)),   # x: streamed per tile
            pl.BlockSpec((S, H), lambda i: (0, 0)),    # w1: resident in VMEM
            pl.BlockSpec((1, H), lambda i: (0, 0)),    # b1: resident
            pl.BlockSpec((1, H), lambda i: (0, 0)),    # w2 row: resident
            pl.BlockSpec((1, 1), lambda i: (0, 0)),    # b2: resident
        ],
        out_specs=pl.BlockSpec((1, tb), lambda i: (0, i)),  # lane-dense output
        compiler_params=pltpu.CompilerParams(
            dimension_semantics=("parallel",),
        ),
    )(x, w1, b1, w2, b2)

    # (1, b_pad) lane-dense -> [B, 1] to match the PyTorch module output.
    return out.reshape(b_pad, 1)[:B]


def init_params(key, state_dim=STATE_DIM, hidden_dim=HIDDEN_DIM):
    # PyTorch nn.Linear default init: U(-1/sqrt(fan_in), 1/sqrt(fan_in)).
    k1, k2, k3, k4 = jax.random.split(key, 4)
    bound1 = 1.0 / jnp.sqrt(state_dim)
    bound2 = 1.0 / jnp.sqrt(hidden_dim)
    # w1 stored [in, out]; w2 stored as a [1, hidden_dim] row (lane-major).
    w1 = jax.random.uniform(k1, (state_dim, hidden_dim), jnp.float32,
                            -bound1, bound1)
    b1 = jax.random.uniform(k2, (1, hidden_dim), jnp.float32, -bound1, bound1)
    w2 = jax.random.uniform(k3, (1, hidden_dim), jnp.float32, -bound2, bound2)
    b2 = jax.random.uniform(k4, (1, 1), jnp.float32, -bound2, bound2)
    return w1, b1, w2, b2


if __name__ == "__main__":
    key = jax.random.PRNGKey(0)
    kx, kx2, kp = jax.random.split(key, 3)

    w1, b1, w2, b2 = init_params(kp)

    def ref_fn(x):
        return jnp.maximum(x @ w1 + b1, 0.0) @ w2.T + b2

    # 1) Small batch (single tile; block == full array).
    x_small = jax.random.normal(kx, (8, STATE_DIM), jnp.float32)
    out_small = jax.block_until_ready(value_net_forward(x_small, w1, b1, w2, b2))
    assert out_small.shape == (8, 1)
    assert jnp.allclose(out_small, ref_fn(x_small), atol=2e-3, rtol=2e-3)

    # 2) Larger, ragged batch exercising the tiled path (grid > 1, padded tail).
    x_big = jax.random.normal(kx2, (1000, STATE_DIM), jnp.float32)
    out_big = jax.block_until_ready(
        value_net_forward(x_big, w1, b1, w2, b2, block_b=512))
    assert out_big.shape == (1000, 1)
    assert jnp.allclose(out_big, ref_fn(x_big), atol=2e-3, rtol=2e-3)

    # 3) bf16 input/weight cast for the fc1 matmul (f32 accumulation retained).
    out_bf16 = jax.block_until_ready(
        value_net_forward(x_big, w1, b1, w2, b2, block_b=512,
                          compute_dtype=jnp.bfloat16))
    assert out_bf16.shape == (1000, 1)
    assert jnp.allclose(out_bf16, ref_fn(x_big), atol=1e-1, rtol=1e-1)

    print("KERNEL_OK")
</pallas_src>

<mosaic_0001>
module attributes {stable_mosaic.version = 11 : i64} {
  func.func @value_net_kernel(%arg0: i32, %arg1: memref<8x48xf32, #tpu.memory_space<vmem>>, %arg2: memref<48x128xf32, #tpu.memory_space<vmem>>, %arg3: memref<1x128xf32, #tpu.memory_space<vmem>>, %arg4: memref<1x128xf32, #tpu.memory_space<vmem>>, %arg5: memref<1x1xf32, #tpu.memory_space<vmem>>, %arg6: memref<1x8xf32, #tpu.memory_space<vmem>>) attributes {dimension_semantics = [#tpu.dimension_semantics<parallel>], iteration_bounds = array<i64: 1>, scalar_prefetch = 0 : i64, scratch_operands = 0 : i64, tpu.core_type = #tpu.core_type<tc>, window_params = [{transform_indices = @transform_0, window_bounds = array<i64: 8, 48>}, {pipeline_mode = #tpu.pipeline_mode<synchronous>, transform_indices = @transform_1, window_bounds = array<i64: 48, 128>}, {pipeline_mode = #tpu.pipeline_mode<synchronous>, transform_indices = @transform_2, window_bounds = array<i64: 1, 128>}, {pipeline_mode = #tpu.pipeline_mode<synchronous>, transform_indices = @transform_3, window_bounds = array<i64: 1, 128>}, {pipeline_mode = #tpu.pipeline_mode<synchronous>, transform_indices = @transform_4, window_bounds = array<i64: 1, 1>}, {transform_indices = @transform_5, window_bounds = array<i64: 1, 8>}]} {
    %c0 = arith.constant 0 : index
    %c0_0 = arith.constant 0 : index
    %0 = vector.load %arg1[%c0, %c0_0] : memref<8x48xf32, #tpu.memory_space<vmem>>, vector<8x48xf32>
    %c0_1 = arith.constant 0 : index
    %c0_2 = arith.constant 0 : index
    %1 = vector.load %arg2[%c0_1, %c0_2] : memref<48x128xf32, #tpu.memory_space<vmem>>, vector<48x128xf32>
    %cst = arith.constant dense<0.000000e+00> : vector<8x128xf32>
    %2 = tpu.matmul %0, %1, %cst {dimension_numbers = #tpu.dot_dimension_numbers<[1], [0], [0], [1], [0, 0, 1, 1], [], []>} : vector<8x48xf32>, vector<48x128xf32>, vector<8x128xf32> -> vector<8x128xf32>
    %c0_3 = arith.constant 0 : index
    %c0_4 = arith.constant 0 : index
    %3 = vector.load %arg3[%c0_3, %c0_4] : memref<1x128xf32, #tpu.memory_space<vmem>>, vector<1x128xf32>
    %4 = vector.broadcast %3 : vector<1x128xf32> to vector<8x128xf32>
    %5 = arith.addf %2, %4 : vector<8x128xf32>
    %cst_5 = arith.constant 0.000000e+00 : f32
    %6 = vector.broadcast %cst_5 : f32 to vector<8x128xf32>
    %7 = arith.maximumf %5, %6 : vector<8x128xf32>
    %c0_6 = arith.constant 0 : index
    %c0_7 = arith.constant 0 : index
    %8 = vector.load %arg4[%c0_6, %c0_7] : memref<1x128xf32, #tpu.memory_space<vmem>>, vector<1x128xf32>
    %cst_8 = arith.constant dense<0.000000e+00> : vector<1x8xf32>
    %9 = tpu.matmul %8, %7, %cst_8 {dimension_numbers = #tpu.dot_dimension_numbers<[1], [1], [0], [0], [0, 0, 1, 0], [], []>} : vector<1x128xf32>, vector<8x128xf32>, vector<1x8xf32> -> vector<1x8xf32>
    %c0_9 = arith.constant 0 : index
    %c0_10 = arith.constant 0 : index
    %10 = vector.load %arg5[%c0_9, %c0_10] : memref<1x1xf32, #tpu.memory_space<vmem>>, vector<1x1xf32>
    %11 = vector.broadcast %10 : vector<1x1xf32> to vector<1x8xf32>
    %12 = arith.addf %9, %11 : vector<1x8xf32>
    %c0_11 = arith.constant 0 : index
    %c0_12 = arith.constant 0 : index
    %13 = vector.load %arg6[%c0_11, %c0_12] : memref<1x8xf32, #tpu.memory_space<vmem>>, vector<1x8xf32>
    tpu.vector_store %arg6[%c0_11, %c0_12], %12 {strides = array<i32>} : memref<1x8xf32, #tpu.memory_space<vmem>>, vector<1x8xf32>,
    return
  }
  func.func @transform_0(%arg0: i32) -> (i32, i32) {
    %c0_i32 = arith.constant 0 : i32
    %c0_i32_0 = arith.constant 0 : i32
    return %arg0, %c0_i32 : i32, i32
  }
  func.func @transform_1(%arg0: i32) -> (i32, i32) {
    %c0_i32 = arith.constant 0 : i32
    %c0_i32_0 = arith.constant 0 : i32
    %c0_i32_1 = arith.constant 0 : i32
    return %c0_i32, %c0_i32_0 : i32, i32
  }
  func.func @transform_2(%arg0: i32) -> (i32, i32) {
    %c0_i32 = arith.constant 0 : i32
    %c0_i32_0 = arith.constant 0 : i32
    %c0_i32_1 = arith.constant 0 : i32
    return %c0_i32, %c0_i32_0 : i32, i32
  }
  func.func @transform_3(%arg0: i32) -> (i32, i32) {
    %c0_i32 = arith.constant 0 : i32
    %c0_i32_0 = arith.constant 0 : i32
    %c0_i32_1 = arith.constant 0 : i32
    return %c0_i32, %c0_i32_0 : i32, i32
  }
  func.func @transform_4(%arg0: i32) -> (i32, i32) {
    %c0_i32 = arith.constant 0 : i32
    %c0_i32_0 = arith.constant 0 : i32
    %c0_i32_1 = arith.constant 0 : i32
    return %c0_i32, %c0_i32_0 : i32, i32
  }
  func.func @transform_5(%arg0: i32) -> (i32, i32) {
    %c0_i32 = arith.constant 0 : i32
    %c0_i32_0 = arith.constant 0 : i32
    return %c0_i32, %arg0 : i32, i32
  }
}

</mosaic_0001>

<bundles_post_ra>
// kernel: value_net_forward.1
= control target key start
LH: loop header
LB: loop body
LE: loop exit
PB: predicated region body
PF: predicated region fallthrough
CT: control target
= control target key end

     0   :  { %s399_s0 = inlined_call_operand.hbm [shape: f32[8,48], index: 0, kind: input, shape index: {}]   ;;  %s400_s1 = inlined_call_operand.hbm [shape: f32[48,128], index: 1, kind: input, shape index: {}]   ;;  %s401_s2 = inlined_call_operand.vmem [shape: f32[1,128], index: 2, kind: input, shape index: {}]   ;;  %s402_s3 = inlined_call_operand.vmem [shape: f32[1,128], index: 3, kind: input, shape index: {}]   ;;  %s403_s4 = inlined_call_operand.<no memory space> [shape: f32[1,1], index: 4, kind: input, shape index: {}]   ;;  %s404_s5 = inlined_call_operand.hbm [shape: f32[1,8], index: 5, kind: output, shape index: {}]  }
   0x1   :  { %v10_v0 = vstv %s403_s4 }
   0x2   :  { %11 = vst [vmem:[#allocation2] sm:$0x1] %v10_v0 }
   0x3   :  { %12 = vsyncpa [#allocation4], 0 }
   0x4   :  { %13 = vsyncpa [#allocation7], 0 }
   0x5   :  { %14 = vsyncpa [#allocation5], 0  ;;  %s343_s20 = smov [#allocation3]   ;;  %s344_s22 = smov [#allocation6]  }
   0x6   :  { %s21_s21 = sshll.u32 %s343_s20, 4  ;;  %s30_s23 = sshll.u32 %s344_s22, 4  ;;  %s22_s21 = int_to_ptr.vmem [resolvable:$true] %s21_s21  ;;  %s31_s23 = int_to_ptr.vmem [resolvable:$true] %s30_s23 }
   0x7   :  { %s285_s24 = scalar_lea.vmem %s22_s21, 128  ;;  %p290_p1 = scmp.lt.s32.totalorder %s22_s21, %s22_s21 }
   0x8   :  { %p286_p0 = scmp.ne.s32.totalorder %s22_s21, %s285_s24  ;;  %p291_p2 = scmp.lt.s32.totalorder %s285_s24, %s285_s24 }
   0xa   :  { %p292_p3 = por %p291_p2, %p290_p1 }
   0xc   :  { %p293_p4 = pnand %p292_p3, %p286_p0 }
   0xe   :  { %296 = shalt.err (!%p293_p4)
}
   0xf   :  { %24 = dma.hbm_to_vmem [thread:$0]  %s399_s0, 128, %s22_s21, [#allocation4]  }
  0x10   :  { %s305_s4 = scalar_lea.vmem %s31_s23, 768  ;;  %p310_p6 = scmp.lt.s32.totalorder %s31_s23, %s31_s23 }
  0x11   :  { %p306_p5 = scmp.ne.s32.totalorder %s31_s23, %s305_s4  ;;  %p311_p7 = scmp.lt.s32.totalorder %s305_s4, %s305_s4 }
  0x13   :  { %p312_p8 = por %p311_p7, %p310_p6 }
  0x15   :  { %p313_p9 = pnand %p312_p8, %p306_p5 }
  0x17   :  { %316 = shalt.err (!%p313_p9)
}
  0x18   :  { %s345_s27 = smov 128   ;;  %s346_s28 = smov 8  }
  0x19   :  { %36 = dma.hbm_to_vmem [thread:$0]  %s400_s1, 768, %s31_s23, [#allocation7], %s345_s27, %s345_s27, %s346_s28  }
  0x1a   :  { %337 = dma.done.wait [#allocation4], 128  }
  0x1b   :  { %338 = vsyncadd [#allocation4], 4294967168 }
  0x1c   :  { %339 = dma.done.wait [#allocation7], 768  }
  0x1d   :  { %340 = vsyncadd [#allocation7], 4294966528  ;;  %v347_v1 = vmov 0.0   ;;  %vm348_vm0 = vmmov 0   ;;  %v55_v2 = vld [vmem:[#allocation6 + $0x28] sm:$0xff]  ;;  %v54_v3 = vld [vmem:[#allocation6 + $0x20] sm:$0xff]  ;;  %v145_v17 = vlaneseq }
  0x1e   :  { %248 = vmatprep.subr.mxu0 %v347_v1  ;;  %260 = vmatprep.mubr.msk.f32.mxu0 %vm348_vm0, %v347_v1  ;;  %v53_v4 = vld [vmem:[#allocation6 + $0x18] sm:$0xff]  ;;  %v52_v5 = vld [vmem:[#allocation6 + $0x10] sm:$0xff]  ;;  %v51_v6 = vld [vmem:[#allocation6 + $0x8] sm:$0xff]  ;;  %vm63_vm1 = vcmask 392192   ;;  %v349_v10 = vmov 0   ;;  %s350_s8 = smov [#allocation8]  }
  0x1f   :  { %263 = vmatprep.subr.mxu1 %v347_v1  ;;  %265 = vmatprep.mubr.msk.f32.mxu1 %vm348_vm0, %v347_v1  ;;  %v50_v7 = vld [vmem:[#allocation6] sm:$0xff]  ;;  %v49_v8 = vld [vmem:[#allocation3] sm:$0xff]  ;;  %v139_v9 = vld [vmem:[#allocation2] sm:$0x1]  ;;  %v146_v18 = vshrl.u32 %v145_v17, 7  ;;  %s227_s9 = sshll.u32 %s350_s8, 4  ;;  %s228_s9 = int_to_ptr.vmem [resolvable:$true] %s227_s9 }
  0x20   :  { %249 = vmatpush3.msra.mxu0 %v55_v2  ;;  %276 = vset.pattern.permute.xlu0 %v349_v10  ;;  %v237_v11 = vld [vmem:[%s401_s2] ss:$0 sm:$0xff]  ;;  %vm219_vm2 = vcmask 57344   ;;  %s317_s2 = scalar_lea.vmem %s228_s9, 16  ;;  %s321_s10 = scalar_lea.vmem %s228_s9, 32 }
  0x21   :  { %250 = vmatprep.subr.mxu0 %v347_v1  ;;  %142 = vperm.xlu0 %276, %v139_v9   ;;  %v138_v16 = vld [vmem:[%s402_s3] sm:$0x1]  ;;  %v147_v19 = vsub.s32 0, %v146_v18  ;;  %p318_p10 = scmp.ne.s32.totalorder %s228_s9, %s317_s2  ;;  %p322_p11 = scmp.lt.s32.totalorder %s228_s9, %s228_s9 }
  0x22   :  { %251 = vmatpush3.msra.mxu0 %v54_v3  ;;  %p323_p12 = scmp.lt.s32.totalorder %s321_s10, %s317_s2 }
  0x23   :  { %252 = vmatprep.subr.mxu0 %v347_v1 }
  0x24   :  { %253 = vmatpush3.msra.mxu0 %v53_v4  ;;  %p324_p13 = por %p323_p12, %p322_p11 }
  0x25   :  { %254 = vmatprep.subr.mxu0 %v347_v1 }
  0x26   :  { %255 = vmatpush3.msra.mxu0 %v52_v5  ;;  %p325_p0 = pnand %p324_p13, %p318_p10 }
  0x27   :  { %256 = vmatprep.subr.mxu0 %v347_v1 }
  0x28   :  { %257 = vmatpush3.msra.mxu0 %v51_v6 }
  0x29   :  { %258 = vmatprep.subr.mxu0 %v347_v1 }
  0x2a   :  { %259 = vmatpush3.msra.mxu0 %v50_v7 }
  0x2b   :  { %261 = vmatmul.mubr.msk.f32.vlgmr.msra.gmra.mxu0 %vm63_vm1, %v49_v8 }
  0x9c   :  { %v143_v20 = vpop.permute.xlu0 %142 }
  0x9d   :  { %v148_v21 = vrot.slane %v143_v20, %v147_v19 }
  0xeb   :  { %v133_v12 = vpop.f32.mrf.mxu0 }
  0xec   :  { %v134_v13 = vadd.f32 %v237_v11, %v133_v12 }
  0xed   :  { %v262_v14 = vpop.f32.mrf.mxu0 }
  0xee   :  { %v137_v15 = vmax.f32 %v134_v13, 0.0 }
  0xf0   :  { %264 = vmatpush3.xpose.msra.mxu1 %v137_v15 }
  0xf3   :  { %266 = vmatmul.mubr.f32.vlgmr.msra.gmra.mxu1 %v138_v16 }
 0x1b3   :  { %v215_v22 = vpop.f32.mrf.mxu1 }
 0x1b4   :  { %v216_v23 = vadd.f32 %v215_v22, %v148_v21 }
 0x1b5   :  { %v267_v24 = vpop.f32.mrf.mxu1 }
 0x1b6   :  { %220 = vst.msk [vmem:[#allocation8] sm:$0x1] %vm219_vm2, %v216_v23 }
 0x1b7   :  { %328 = shalt.err (!%p325_p0)
}
 0x1b8   :  { %230 = dma.vmem_to_hbm [thread:$0]  %s228_s9, 16, %s404_s5, [#allocation5]  }
 0x1b9   :  { %341 = dma.done.wait [#allocation5], 16  }
 0x1ba   :  { %342 = vsyncadd [#allocation5], 4294967280 }
 0x1bb   :  { %234 = vsyncpa [#allocation4], 1 }
 0x1bc   :  { %235 = vsyncpa [#allocation7], 1 }
 0x1bd   :  { %236 = vsyncpa [#allocation5], 1 }

</bundles_post_ra>
